<compile_context>
chip_gen: v7x
topology: tpu7x:2x2x1
jax: 0.10.0
libtpu: 0.0.40
codegen_flags: <defaults>
</compile_context>

<pallas_src>
import jax
import jax.numpy as jnp
from jax.experimental import pallas as pl
from jax.experimental.pallas import tpu as pltpu

IN_DIM = 28 * 28          # 784
H_DIM = 300
O_DIM = 10
H_PAD = 384               # 300 padded to 3*128 (lane aligned hidden)
O_PAD = 128               # 10 padded to 128 (lane-dense output stores)
TILE_N = 2048             # batch rows per grid step
VMEM_LIMIT_BYTES = 48 * 1024 * 1024


def _round_up(x, m):
    return ((x + m - 1) // m) * m


def _pick_tile(n):
    """Batch tile: single full block for small n, otherwise >=2 grid steps
    (so a v7x megacore can split the batch) capped at TILE_N."""
    if n <= 256:
        return n                      # block dim == full array dim is always legal
    half = -(-n // 2)                 # ceil(n / 2)
    return min(TILE_N, _round_up(half, 16))


def _mlp_kernel(x_ref, w1_ref, b1_ref, w2_ref, b2_ref, o_ref):
    # fc1 on the MXU: x arrives in its native dtype (no extra HBM pass in the
    # wrapper); cast to bf16 in-register, accumulate in f32.
    x = x_ref[...].astype(jnp.bfloat16)
    h = jnp.dot(x, w1_ref[...], preferred_element_type=jnp.float32)
    h = jnp.maximum(h + b1_ref[...], 0.0)             # (tile, 384) + (1, 384)
    # fc2 kept fully in f32 (weight-resident and only ~14% of FLOPs).
    o = jnp.dot(h, w2_ref[...], preferred_element_type=jnp.float32)
    o_ref[...] = jnp.maximum(o + b2_ref[...], 0.0).astype(o_ref.dtype)


def net_teacher_forward(x, w1, b1, w2, b2):
    """x: (N, 1, 28, 28) or anything flattenable to (N, 784). Returns (N, 10) f32.

    Semantics match PyTorch: relu(fc2(relu(fc1(x.view(-1, 784))))).
    Weights are stored as (in_features, out_features), i.e. y = x @ W + b.
    """
    x2d = x.reshape(-1, IN_DIM)
    n = x2d.shape[0]
    tile = _pick_tile(n)
    grid = (pl.cdiv(n, tile),)

    # Resident (constant index_map) parameters, padded once to lane-aligned
    # shapes.  w1 in bf16 (fast fc1 MXU path), w2/biases in f32.
    w1p = jnp.pad(w1.astype(jnp.bfloat16), ((0, 0), (0, H_PAD - w1.shape[-1])))
    b1p = jnp.pad(b1.astype(jnp.float32).reshape(1, -1),
                  ((0, 0), (0, H_PAD - b1.shape[-1])))
    w2p = jnp.pad(w2.astype(jnp.float32),
                  ((0, H_PAD - w2.shape[0]), (0, O_PAD - w2.shape[-1])))
    b2p = jnp.pad(b2.astype(jnp.float32).reshape(1, -1),
                  ((0, 0), (0, O_PAD - b2.shape[-1])))

    n_cov = grid[0] * tile
    flops = 2 * n_cov * (IN_DIM * H_PAD + H_PAD * O_PAD)
    bytes_accessed = (n * IN_DIM * x2d.dtype.itemsize   # streamed x (native dtype)
                      + IN_DIM * H_PAD * 2              # w1 (bf16, resident)
                      + H_PAD * 4                       # b1 (f32)
                      + H_PAD * O_PAD * 4               # w2 (f32, resident)
                      + O_PAD * 4                       # b2 (f32)
                      + n * O_PAD * 4)                  # out (f32)

    out = pl.pallas_call(
        _mlp_kernel,
        out_shape=jax.ShapeDtypeStruct((n, O_PAD), jnp.float32),
        grid_spec=pltpu.PrefetchScalarGridSpec(
            num_scalar_prefetch=0,
            grid=grid,
            in_specs=[
                pl.BlockSpec((tile, IN_DIM), lambda i: (i, 0)),   # streamed x
                pl.BlockSpec((IN_DIM, H_PAD), lambda i: (0, 0)),  # resident w1
                pl.BlockSpec((1, H_PAD), lambda i: (0, 0)),       # resident b1
                pl.BlockSpec((H_PAD, O_PAD), lambda i: (0, 0)),   # resident w2
                pl.BlockSpec((1, O_PAD), lambda i: (0, 0)),       # resident b2
            ],
            out_specs=pl.BlockSpec((tile, O_PAD), lambda i: (i, 0)),
        ),
        compiler_params=pltpu.CompilerParams(
            dimension_semantics=("parallel",),
            vmem_limit_bytes=VMEM_LIMIT_BYTES),
        cost_estimate=pl.CostEstimate(
            flops=flops, transcendentals=0, bytes_accessed=bytes_accessed),
    )(x2d, w1p, b1p, w2p, b2p)

    # Only the cheap 128 -> 10 column slice remains (no batch-row padding).
    return out[:, :O_DIM]


def init_params(key):
    """Deterministic init mirroring nn.Linear's U(-1/sqrt(fan_in), 1/sqrt(fan_in))."""
    k1, k2, k3, k4 = jax.random.split(key, 4)
    lim1 = 1.0 / jnp.sqrt(float(IN_DIM))
    lim2 = 1.0 / jnp.sqrt(float(H_DIM))
    w1 = jax.random.uniform(k1, (IN_DIM, H_DIM), jnp.float32, -lim1, lim1)
    b1 = jax.random.uniform(k2, (1, H_DIM), jnp.float32, -lim1, lim1)
    w2 = jax.random.uniform(k3, (H_DIM, O_DIM), jnp.float32, -lim2, lim2)
    b2 = jax.random.uniform(k4, (1, O_DIM), jnp.float32, -lim2, lim2)
    return w1, b1, w2, b2


if __name__ == "__main__":
    key = jax.random.PRNGKey(0)
    kx, kp = jax.random.split(key)
    # Small MNIST-like batch: (N=2, C=1, H=28, W=28), same layout as PyTorch.
    x = jax.random.normal(kx, (2, 1, 28, 28), jnp.float32)
    w1, b1, w2, b2 = init_params(kp)

    out = net_teacher_forward(x, w1, b1, w2, b2)
    out = jax.block_until_ready(out)

    # Plain-JAX f32 reference of the same forward pass (kernel uses bf16
    # fc1 operands with f32 accumulation; fc2 fully f32 -> tight tolerance).
    x2d = x.reshape(-1, IN_DIM)
    h_ref = jnp.maximum(
        jnp.dot(x2d, w1, precision=jax.lax.Precision.HIGHEST) + b1, 0.0)
    ref = jnp.maximum(
        jnp.dot(h_ref, w2, precision=jax.lax.Precision.HIGHEST) + b2, 0.0)

    assert out.shape == (2, 10), out.shape
    assert jnp.allclose(out, ref, atol=2e-2, rtol=2e-2), (
        float(jnp.max(jnp.abs(out - ref))))

    print("KERNEL_OK")
</pallas_src>

<mosaic_0001>
module attributes {stable_mosaic.version = 11 : i64} {
  func.func @_mlp_kernel(%arg0: i32, %arg1: memref<2x784xf32, #tpu.memory_space<vmem>>, %arg2: memref<784x384xbf16, #tpu.memory_space<vmem>>, %arg3: memref<1x384xf32, #tpu.memory_space<vmem>>, %arg4: memref<384x128xf32, #tpu.memory_space<vmem>>, %arg5: memref<1x128xf32, #tpu.memory_space<vmem>>, %arg6: memref<2x128xf32, #tpu.memory_space<vmem>>) attributes {dimension_semantics = [#tpu.dimension_semantics<parallel>], iteration_bounds = array<i64: 1>, scalar_prefetch = 0 : i64, scratch_operands = 0 : i64, tpu.core_type = #tpu.core_type<tc>, window_params = [{transform_indices = @transform_0, window_bounds = array<i64: 2, 784>}, {pipeline_mode = #tpu.pipeline_mode<synchronous>, transform_indices = @transform_1, window_bounds = array<i64: 784, 384>}, {pipeline_mode = #tpu.pipeline_mode<synchronous>, transform_indices = @transform_2, window_bounds = array<i64: 1, 384>}, {pipeline_mode = #tpu.pipeline_mode<synchronous>, transform_indices = @transform_3, window_bounds = array<i64: 384, 128>}, {pipeline_mode = #tpu.pipeline_mode<synchronous>, transform_indices = @transform_4, window_bounds = array<i64: 1, 128>}, {transform_indices = @transform_5, window_bounds = array<i64: 2, 128>}]} {
    %c0 = arith.constant 0 : index
    %c0_0 = arith.constant 0 : index
    %0 = vector.load %arg1[%c0, %c0_0] : memref<2x784xf32, #tpu.memory_space<vmem>>, vector<2x784xf32>
    %1 = arith.truncf %0 : vector<2x784xf32> to vector<2x784xbf16>
    %c0_1 = arith.constant 0 : index
    %c0_2 = arith.constant 0 : index
    %2 = vector.load %arg2[%c0_1, %c0_2] : memref<784x384xbf16, #tpu.memory_space<vmem>>, vector<784x384xbf16>
    %cst = arith.constant dense<0.000000e+00> : vector<2x384xf32>
    %3 = tpu.matmul %1, %2, %cst {dimension_numbers = #tpu.dot_dimension_numbers<[1], [0], [0], [1], [0, 0, 1, 1], [], []>} : vector<2x784xbf16>, vector<784x384xbf16>, vector<2x384xf32> -> vector<2x384xf32>
    %c0_3 = arith.constant 0 : index
    %c0_4 = arith.constant 0 : index
    %4 = vector.load %arg3[%c0_3, %c0_4] : memref<1x384xf32, #tpu.memory_space<vmem>>, vector<1x384xf32>
    %5 = vector.broadcast %4 : vector<1x384xf32> to vector<2x384xf32>
    %6 = arith.addf %3, %5 : vector<2x384xf32>
    %cst_5 = arith.constant 0.000000e+00 : f32
    %7 = vector.broadcast %cst_5 : f32 to vector<2x384xf32>
    %8 = arith.maximumf %6, %7 : vector<2x384xf32>
    %c0_6 = arith.constant 0 : index
    %c0_7 = arith.constant 0 : index
    %9 = vector.load %arg4[%c0_6, %c0_7] : memref<384x128xf32, #tpu.memory_space<vmem>>, vector<384x128xf32>
    %cst_8 = arith.constant dense<0.000000e+00> : vector<2x128xf32>
    %10 = tpu.matmul %8, %9, %cst_8 {dimension_numbers = #tpu.dot_dimension_numbers<[1], [0], [0], [1], [0, 0, 1, 1], [], []>} : vector<2x384xf32>, vector<384x128xf32>, vector<2x128xf32> -> vector<2x128xf32>
    %c0_9 = arith.constant 0 : index
    %c0_10 = arith.constant 0 : index
    %11 = vector.load %arg5[%c0_9, %c0_10] : memref<1x128xf32, #tpu.memory_space<vmem>>, vector<1x128xf32>
    %12 = vector.broadcast %11 : vector<1x128xf32> to vector<2x128xf32>
    %13 = arith.addf %10, %12 : vector<2x128xf32>
    %cst_11 = arith.constant 0.000000e+00 : f32
    %14 = vector.broadcast %cst_11 : f32 to vector<2x128xf32>
    %15 = arith.maximumf %13, %14 : vector<2x128xf32>
    %c0_12 = arith.constant 0 : index
    %c0_13 = arith.constant 0 : index
    %16 = vector.load %arg6[%c0_12, %c0_13] : memref<2x128xf32, #tpu.memory_space<vmem>>, vector<2x128xf32>
    tpu.vector_store %arg6[%c0_12, %c0_13], %15 {strides = array<i32>} : memref<2x128xf32, #tpu.memory_space<vmem>>, vector<2x128xf32>,
    return
  }
  func.func @transform_0(%arg0: i32) -> (i32, i32) {
    %c0_i32 = arith.constant 0 : i32
    %c0_i32_0 = arith.constant 0 : i32
    return %arg0, %c0_i32 : i32, i32
  }
  func.func @transform_1(%arg0: i32) -> (i32, i32) {
    %c0_i32 = arith.constant 0 : i32
    %c0_i32_0 = arith.constant 0 : i32
    %c0_i32_1 = arith.constant 0 : i32
    return %c0_i32, %c0_i32_0 : i32, i32
  }
  func.func @transform_2(%arg0: i32) -> (i32, i32) {
    %c0_i32 = arith.constant 0 : i32
    %c0_i32_0 = arith.constant 0 : i32
    %c0_i32_1 = arith.constant 0 : i32
    return %c0_i32, %c0_i32_0 : i32, i32
  }
  func.func @transform_3(%arg0: i32) -> (i32, i32) {
    %c0_i32 = arith.constant 0 : i32
    %c0_i32_0 = arith.constant 0 : i32
    %c0_i32_1 = arith.constant 0 : i32
    return %c0_i32, %c0_i32_0 : i32, i32
  }
  func.func @transform_4(%arg0: i32) -> (i32, i32) {
    %c0_i32 = arith.constant 0 : i32
    %c0_i32_0 = arith.constant 0 : i32
    %c0_i32_1 = arith.constant 0 : i32
    return %c0_i32, %c0_i32_0 : i32, i32
  }
  func.func @transform_5(%arg0: i32) -> (i32, i32) {
    %c0_i32 = arith.constant 0 : i32
    %c0_i32_0 = arith.constant 0 : i32
    return %arg0, %c0_i32 : i32, i32
  }
}

</mosaic_0001>

<bundles_post_ra>
// kernel: tpu_custom_call.1
= control target key start
LH: loop header
LB: loop body
LE: loop exit
PB: predicated region body
PF: predicated region fallthrough
CT: control target
= control target key end

     0   :  { %10 = vsyncpa [#allocation3], 0  ;;  %s2500_s0 = inlined_call_operand.hbm [shape: f32[2,784], index: 0, kind: input, shape index: {}]   ;;  %s2501_s1 = inlined_call_operand.hbm [shape: bf16[784,384], index: 1, kind: input, shape index: {}]   ;;  %s2502_s2 = inlined_call_operand.vmem [shape: f32[1,384], index: 2, kind: input, shape index: {}]   ;;  %s2503_s3 = inlined_call_operand.hbm [shape: f32[384,128], index: 3, kind: input, shape index: {}]   ;;  %s2504_s4 = inlined_call_operand.vmem [shape: f32[1,128], index: 4, kind: input, shape index: {}]   ;;  %s2505_s5 = inlined_call_operand.hbm [shape: f32[2,128], index: 5, kind: output, shape index: {}]  }
   0x1   :  { %11 = vsyncpa [#allocation6], 0 }
   0x2   :  { %12 = vsyncpa [#allocation4], 0  ;;  %s2337_s18 = smov [#allocation5]   ;;  %s2243_s22 = scalar_lea.hbm %s2501_s1, 18816 }
   0x3   :  { %s28_s19 = sshll.u32 %s2337_s18, 4  ;;  %p2244_p0 = scmp.ne.s32.totalorder %s2501_s1, %s2243_s22  ;;  %s29_s19 = int_to_ptr.vmem [resolvable:$true] %s28_s19 }
   0x4   :  { %p2247_p1 = scmp.lt.u32.totalorder %s2243_s22, %s2501_s1 }
   0x6   :  { %p2249_p2 = pnand %p2247_p1, %p2244_p0 }
   0x8   :  { %2252 = shalt.err (!%p2249_p2)
}
   0x9   :  { %s2253_s27 = scalar_lea.vmem %s29_s19, 18816  ;;  %p2258_p4 = scmp.lt.s32.totalorder %s29_s19, %s29_s19 }
   0xa   :  { %p2254_p3 = scmp.ne.s32.totalorder %s29_s19, %s2253_s27  ;;  %p2259_p5 = scmp.lt.s32.totalorder %s2253_s27, %s2253_s27 }
   0xc   :  { %p2260_p6 = por %p2259_p5, %p2258_p4 }
   0xe   :  { %p2261_p7 = pnand %p2260_p6, %p2254_p3 }
  0x10   :  { %2264 = shalt.err (!%p2261_p7)
}
  0x11   :  { %s2338_s28 = smov 192   ;;  %s2339_s29 = smov 12  }
  0x12   :  { %34 = dma.hbm_to_vmem [thread:$0]  %s2501_s1, 18816, %s29_s19, [#allocation6], %s2338_s28, %s2338_s28, %s2339_s29  }
  0x13   :  { %s2340_s7 = smov [#allocation2]   ;;  %s2341_s9 = smov [#allocation7]  }
  0x14   :  { %s19_s8 = sshll.u32 %s2340_s7, 4  ;;  %s42_s10 = sshll.u32 %s2341_s9, 4  ;;  %s20_s8 = int_to_ptr.vmem [resolvable:$true] %s19_s8  ;;  %s43_s10 = int_to_ptr.vmem [resolvable:$true] %s42_s10 }
  0x15   :  { %s2265_s13 = scalar_lea.hbm %s2500_s0, 224 }
  0x16   :  { %p2266_p8 = scmp.ne.s32.totalorder %s2500_s0, %s2265_s13  ;;  %p2269_p9 = scmp.lt.u32.totalorder %s2265_s13, %s2500_s0 }
  0x18   :  { %p2271_p10 = pnand %p2269_p9, %p2266_p8 }
  0x1a   :  { %2274 = shalt.err (!%p2271_p10)
}
  0x1b   :  { %s2275_s1 = scalar_lea.vmem %s20_s8, 224  ;;  %p2280_p12 = scmp.lt.s32.totalorder %s20_s8, %s20_s8 }
  0x1c   :  { %p2276_p11 = scmp.ne.s32.totalorder %s20_s8, %s2275_s1  ;;  %p2281_p13 = scmp.lt.s32.totalorder %s2275_s1, %s2275_s1 }
  0x1e   :  { %p2282_p0 = por %p2281_p13, %p2280_p12 }
  0x20   :  { %p2283_p1 = pnand %p2282_p0, %p2276_p11 }
  0x22   :  { %2286 = shalt.err (!%p2283_p1)
}
  0x23   :  { %22 = dma.hbm_to_vmem [thread:$0]  %s2500_s0, 224, %s20_s8, [#allocation3]  }
  0x24   :  { %s2287_s22 = scalar_lea.hbm %s2503_s3, 6144 }
  0x25   :  { %p2288_p2 = scmp.ne.s32.totalorder %s2503_s3, %s2287_s22  ;;  %p2291_p3 = scmp.lt.u32.totalorder %s2287_s22, %s2503_s3 }
  0x27   :  { %p2293_p4 = pnand %p2291_p3, %p2288_p2 }
  0x29   :  { %2296 = shalt.err (!%p2293_p4)
}
  0x2a   :  { %s2297_s27 = scalar_lea.vmem %s43_s10, 6144  ;;  %p2302_p6 = scmp.lt.s32.totalorder %s43_s10, %s43_s10 }
  0x2b   :  { %p2298_p5 = scmp.ne.s32.totalorder %s43_s10, %s2297_s27  ;;  %p2303_p7 = scmp.lt.s32.totalorder %s2297_s27, %s2297_s27 }
  0x2d   :  { %p2304_p8 = por %p2303_p7, %p2302_p6 }
  0x2f   :  { %p2305_p9 = pnand %p2304_p8, %p2298_p5 }
  0x31   :  { %2308 = shalt.err (!%p2305_p9)
}
  0x32   :  { %s2342_s0 = smov 128   ;;  %s2343_s28 = smov 8  }
  0x33   :  { %48 = dma.hbm_to_vmem [thread:$0]  %s2503_s3, 6144, %s43_s10, [#allocation6], %s2342_s0, %s2342_s0, %s2343_s28  }
  0x34   :  { %2331 = dma.done.wait [#allocation3], 224  }
  0x35   :  { %2332 = vsyncadd [#allocation3], 4294967072 }
  0x36   :  { %2333 = dma.done.wait [#allocation6], 24960  }
  0x37   :  { %2334 = vsyncadd [#allocation6], 4294942336  ;;  %v2344_v0 = vmov 0   ;;  %v2045_v1 = vld [vmem:[#allocation5 + $0x4] ss:$12 sps:$4 sm:$0xff]   ;;  %v69_v12 = vlaneseq  ;;  %vm1109_vm0 = vcmask 130048  }
  0x38   :  { %1268 = vmatprep.mubr.bf16.mxu1 %v2344_v0  ;;  %v2047_v2 = vld [vmem:[#allocation5] ss:$12 sps:$4 sm:$0xff]   ;;  %1113 = vmatprep.subr.bf16.mxu0 %v2045_v1  ;;  %v2048_v3 = vld [vmem:[#allocation5 + $0x1c] ss:$12 sps:$4 sm:$0xff]   ;;  %v2050_v4 = vld [vmem:[#allocation5 + $0x18] ss:$12 sps:$4 sm:$0xff]  }
  0x39   :  { %1114 = vmatpush1.bf16.msra.mxu0 %v2047_v2  ;;  %v2051_v5 = vld [vmem:[#allocation5 + $0x34] ss:$12 sps:$4 sm:$0xff]   ;;  %v2053_v6 = vld [vmem:[#allocation5 + $0x30] ss:$12 sps:$4 sm:$0xff]   ;;  %v2054_v7 = vld [vmem:[#allocation5 + $0x4c] ss:$12 sps:$4 sm:$0xff]  }
  0x3a   :  { %1115 = vmatprep.subr.bf16.mxu0 %v2048_v3  ;;  %v2056_v8 = vld [vmem:[#allocation5 + $0x48] ss:$12 sps:$4 sm:$0xff]   ;;  %v2057_v9 = vld [vmem:[#allocation5 + $0x64] ss:$12 sps:$4 sm:$0xff]   ;;  %v2345_v10 = vmov 1983009808  }
  0x3b   :  { %v67_v11 = vunpack.c.l.s4 %v2345_v10  ;;  %v2059_v13 = vld [vmem:[#allocation5 + $0x60] ss:$12 sps:$4 sm:$0xff]   ;;  %v2060_v14 = vld [vmem:[#allocation5 + $0x7c] ss:$12 sps:$4 sm:$0xff]   ;;  %v2062_v15 = vld [vmem:[#allocation5 + $0x78] ss:$12 sps:$4 sm:$0xff]  }
  0x3c   :  { %v2416_v17 = vshrl.u32 %v69_v12, 7  ;;  %v2087_v18 = vld [vmem:[#allocation5 + $0x484] ss:$12 sps:$4 sm:$0xff]   ;;  %v2063_v19 = vld [vmem:[#allocation5 + $0x94] ss:$12 sps:$4 sm:$0xff]   ;;  %vm2347_vm1 = vmmov 0  }
  0x3d   :  { %1116 = vmatpush1.bf16.msra.mxu0 %v2050_v4  ;;  %v68_v16 = vunpack.c.0.s8 %v67_v11  ;;  %v2091_v20 = vld [vmem:[#allocation5 + $0x480] ss:$12 sps:$4 sm:$0xff]   ;;  %1236 = vmatprep.subr.bf16.mxu1 %v2087_v18  ;;  %v2093_v21 = vld [vmem:[#allocation5 + $0xc8] ss:$12 sps:$4 sm:$0xff]   ;;  %v2065_v23 = vld [vmem:[#allocation5 + $0x90] ss:$12 sps:$4 sm:$0xff]  }
  0x3e   :  { %1117 = vmatprep.subr.bf16.mxu0 %v2051_v5  ;;  %1237 = vmatpush1.bf16.msra.mxu1 %v2091_v20  ;;  %v62_v24 = vld [vmem:[#allocation2 + $0x8] sm:$0x3f]  ;;  %v2068_v28 = vld [vmem:[#allocation5 + $0xa8] ss:$12 sps:$4 sm:$0xff]   ;;  %v2069_v31 = vld [vmem:[#allocation5 + $0xc4] ss:$12 sps:$4 sm:$0xff]  }
  0x3f   :  { %v2419_v22 = vsub.s32 %v68_v16, %v2416_v17  ;;  %v2066_v25 = vld [vmem:[#allocation5 + $0xac] ss:$12 sps:$4 sm:$0xff]   ;;  %1803 = vmatprep.subr.bf16.mxu1 %v2093_v21  ;;  %v82_v26 = vcombine.high %v62_v24, %v62_v24  ;;  %v2097_v32 = vld [vmem:[#allocation5 + $0x8] ss:$12 sps:$4 sm:$0xff]   ;;  %v2110_v45 = vld [vmem:[#allocation5 + $0x110] ss:$12 sps:$4 sm:$0xff]  }
  0x40   :  { %v2425_v30 = vld [vmem:[#allocation2] sm:$0xff]  ;;  %v2099_v35 = vld [vmem:[#allocation5 + $0xe0] ss:$12 sps:$4 sm:$0xff]   ;;  %v2072_v38 = vld [vmem:[#allocation5 + $0xdc] ss:$12 sps:$4 sm:$0xff]   ;;  %s2349_s8 = smov [#allocation8]  }
  0x41   :  { %1118 = vmatpush1.bf16.msra.mxu0 %v2053_v6  ;;  %v2422_v27 = vrot.slane %v62_v24, %v2419_v22  ;;  %v96_v29 = vrot.slane %v82_v26, %v2419_v22  ;;  %v2429_v33 = vrot.slane %v2425_v30, %v2419_v22  ;;  %v2071_v37 = vld [vmem:[#allocation5 + $0xc0] ss:$12 sps:$4 sm:$0xff]   ;;  %v2105_v41 = vld [vmem:[#allocation5 + $0xf8] ss:$12 sps:$4 sm:$0xff]   ;;  %v2077_v46 = vld [vmem:[#allocation5 + $0xf0] ss:$12 sps:$4 sm:$0xff]   ;;  %v65_v58 = vcombine.high %v2425_v30, %v2425_v30 }
  0x42   :  { %1119 = vmatprep.subr.bf16.mxu0 %v2054_v7  ;;  %v2104_v40 = vld [vmem:[#allocation5 + $0x20] ss:$12 sps:$4 sm:$0xff]   ;;  %v2074_v42 = vld [vmem:[#allocation5 + $0xd8] ss:$12 sps:$4 sm:$0xff]   ;;  %v2114_v47 = vld [vmem:[#allocation5 + $0x50] ss:$12 sps:$4 sm:$0xff]  }
  0x43   :  { %v2431_v34 = vpack.c.bf16 %v96_v29, %v96_v29  ;;  %v80_v36 = vcombine.high %v2429_v33, %v2429_v33  ;;  %v2075_v43 = vld [vmem:[#allocation5 + $0xf4] ss:$12 sps:$4 sm:$0xff]   ;;  %v2109_v44 = vld [vmem:[#allocation5 + $0x38] ss:$12 sps:$4 sm:$0xff]   ;;  %v2084_v55 = vld [vmem:[#allocation5 + $0x13c] ss:$12 sps:$4 sm:$0xff]   ;;  %v2440_v0 = vrot.slane %v65_v58, %v2419_v22 }
  0x44   :  { %v2078_v48 = vld [vmem:[#allocation5 + $0x10c] ss:$12 sps:$4 sm:$0xff]   ;;  %v2115_v49 = vld [vmem:[#allocation5 + $0x128] ss:$12 sps:$4 sm:$0xff]   ;;  %v2081_v51 = vld [vmem:[#allocation5 + $0x124] ss:$12 sps:$4 sm:$0xff]  }
  0x45   :  { %1120 = vmatpush1.bf16.msra.mxu0 %v2056_v8  ;;  %1800 = vmatmul.mubr.msk.bf16.vlgmr.msra.gmra.mrb[0].mxu1 %vm1109_vm0, %v2431_v34  ;;  %v106_v39 = vpack.c.bf16 %v80_v36, %v80_v36  ;;  %v2080_v50 = vld [vmem:[#allocation5 + $0x108] ss:$12 sps:$4 sm:$0xff]   ;;  %v2120_v53 = vld [vmem:[#allocation5 + $0x140] ss:$12 sps:$4 sm:$0xff]   ;;  %v2125_v57 = vld [vmem:[#allocation5 + $0x158] ss:$12 sps:$4 sm:$0xff]   ;;  %v81_v4 = vcombine.high %v2440_v0, %v2440_v0  ;;  %v105_v8 = vpack.c.bf16 %v2429_v33, %v2429_v33 }
  0x46   :  { %1121 = vmatprep.subr.bf16.mxu0 %v2057_v9  ;;  %1804 = vmatpush3.bf16.msra.mxu1 %v2097_v32  ;;  %v2119_v52 = vld [vmem:[#allocation5 + $0x68] ss:$12 sps:$4 sm:$0xff]   ;;  %v2083_v54 = vld [vmem:[#allocation5 + $0x120] ss:$12 sps:$4 sm:$0xff]   ;;  %v2086_v59 = vld [vmem:[#allocation5 + $0x138] ss:$12 sps:$4 sm:$0xff]  }
  0x47   :  { %1805 = vmatprep.subr.bf16.mxu1 %v2099_v35  ;;  %1145 = vmatprep.mubr.bf16.mxu0 %v106_v39  ;;  %v2124_v56 = vld [vmem:[#allocation5 + $0x80] ss:$12 sps:$4 sm:$0xff]   ;;  %v2129_v61 = vld [vmem:[#allocation5 + $0x98] ss:$12 sps:$4 sm:$0xff]   ;;  %v2130_v62 = vld [vmem:[#allocation5 + $0x170] ss:$12 sps:$4 sm:$0xff]   ;;  %v108_v11 = vpack.c.bf16 %v81_v4, %v81_v4 }
  0x48   :  { %1309 = vmatprep.mubr.bf16.mxu1 %v106_v39  ;;  %v2089_v60 = vld [vmem:[#allocation5 + $0x154] ss:$12 sps:$4 sm:$0xff]   ;;  %v2092_v63 = vld [vmem:[#allocation5 + $0x150] ss:$12 sps:$4 sm:$0xff]   ;;  %v2094_v1 = vld [vmem:[#allocation5 + $0x16c] ss:$12 sps:$4 sm:$0xff]  }
  0x49   :  { %1122 = vmatpush1.bf16.msra.mxu0 %v2059_v13  ;;  %v2134_v2 = vld [vmem:[#allocation5 + $0xb0] ss:$12 sps:$4 sm:$0xff]   ;;  %v2135_v3 = vld [vmem:[#allocation5 + $0x248] ss:$12 sps:$4 sm:$0xff]   ;;  %v2140_v9 = vld [vmem:[#allocation5 + $0x260] ss:$12 sps:$4 sm:$0xff]  }
  0x4a   :  { %1123 = vmatprep.subr.bf16.mxu0 %v2060_v14  ;;  %1806 = vmatpush3.bf16.msra.mxu1 %v2104_v40  ;;  %v2098_v5 = vld [vmem:[#allocation5 + $0x168] ss:$12 sps:$4 sm:$0xff]   ;;  %v2103_v7 = vld [vmem:[#allocation5 + $0x184] ss:$12 sps:$4 sm:$0xff]   ;;  %v2101_v10 = vld [vmem:[#allocation5 + $0x180] ss:$12 sps:$4 sm:$0xff]  }
  0x4b   :  { %1807 = vmatprep.subr.bf16.mxu1 %v2105_v41  ;;  %v2139_v6 = vld [vmem:[#allocation5 + $0x188] ss:$12 sps:$4 sm:$0xff]   ;;  %v2144_v13 = vld [vmem:[#allocation5 + $0x1a0] ss:$12 sps:$4 sm:$0xff]   ;;  %v2145_v14 = vld [vmem:[#allocation5 + $0x278] ss:$12 sps:$4 sm:$0xff]  }
  0x4c   :  { %v2108_v12 = vld [vmem:[#allocation5 + $0x19c] ss:$12 sps:$4 sm:$0xff]   ;;  %v2113_v16 = vld [vmem:[#allocation5 + $0x1b4] ss:$12 sps:$4 sm:$0xff]   ;;  %v2149_v18 = vld [vmem:[#allocation5 + $0x1b8] ss:$12 sps:$4 sm:$0xff]  }
  0x4d   :  { %1124 = vmatpush1.bf16.msra.mxu0 %v2062_v15  ;;  %v2106_v15 = vld [vmem:[#allocation5 + $0x198] ss:$12 sps:$4 sm:$0xff]   ;;  %v2111_v20 = vld [vmem:[#allocation5 + $0x1b0] ss:$12 sps:$4 sm:$0xff]   ;;  %v2116_v24 = vld [vmem:[#allocation5 + $0x1c8] ss:$12 sps:$4 sm:$0xff]  }
  0x4e   :  { %1125 = vmatprep.subr.bf16.mxu0 %v2063_v19  ;;  %1808 = vmatpush3.bf16.msra.mxu1 %v2109_v44  ;;  %v2150_v19 = vld [vmem:[#allocation5 + $0x290] ss:$12 sps:$4 sm:$0xff]   ;;  %v2118_v21 = vld [vmem:[#allocation5 + $0x1cc] ss:$12 sps:$4 sm:$0xff]   ;;  %v2159_v26 = vld [vmem:[#allocation5 + $0x1e8] ss:$12 sps:$4 sm:$0xff]  }
  0x4f   :  { %1809 = vmatprep.subr.bf16.mxu1 %v2110_v45  ;;  %v2154_v22 = vld [vmem:[#allocation5 + $0x1d0] ss:$12 sps:$4 sm:$0xff]   ;;  %v2121_v29 = vld [vmem:[#allocation5 + $0x1e0] ss:$12 sps:$4 sm:$0xff]   ;;  %v2165_v32 = vld [vmem:[#allocation5 + $0x2d8] ss:$12 sps:$4 sm:$0xff]   ;;  %v2450_v45 = vpack.c.bf16 %v2440_v0, %v2440_v0 }
  0x50   :  { %v2164_v30 = vld [vmem:[#allocation5 + $0x200] ss:$12 sps:$4 sm:$0xff]   ;;  %v2126_v33 = vld [vmem:[#allocation5 + $0x1f8] ss:$12 sps:$4 sm:$0xff]   ;;  %v2174_v40 = vld [vmem:[#allocation5 + $0x230] ss:$12 sps:$4 sm:$0xff]  }
  0x51   :  { %1126 = vmatpush1.bf16.msra.mxu0 %v2065_v23  ;;  %v2155_v23 = vld [vmem:[#allocation5 + $0x2a8] ss:$12 sps:$4 sm:$0xff]   ;;  %v2169_v36 = vld [vmem:[#allocation5 + $0x218] ss:$12 sps:$4 sm:$0xff]   ;;  %v2194_v58 = vld [vmem:[#allocation5 + $0x350] ss:$12 sps:$4 sm:$0xff]  }
  0x52   :  { %1127 = vmatprep.subr.bf16.mxu0 %v2066_v25  ;;  %1810 = vmatpush3.bf16.msra.mxu1 %v2114_v47  ;;  %v2123_v25 = vld [vmem:[#allocation5 + $0x1e4] ss:$12 sps:$4 sm:$0xff]   ;;  %v2133_v35 = vld [vmem:[#allocation5 + $0x214] ss:$12 sps:$4 sm:$0xff]   ;;  %v2138_v39 = vld [vmem:[#allocation5 + $0x22c] ss:$12 sps:$4 sm:$0xff]  }
  0x53   :  { %1811 = vmatprep.subr.bf16.mxu1 %v2115_v49  ;;  %v2175_v41 = vld [vmem:[#allocation5 + $0x3c8] ss:$12 sps:$4 sm:$0xff]   ;;  %v2143_v44 = vld [vmem:[#allocation5 + $0x244] ss:$12 sps:$4 sm:$0xff]   ;;  %v2180_v47 = vld [vmem:[#allocation5 + $0x3e0] ss:$12 sps:$4 sm:$0xff]  }
  0x54   :  { %v2200_v0 = vld [vmem:[#allocation5 + $0x440] ss:$12 sps:$4 sm:$0xff]   ;;  %v2205_v4 = vld [vmem:[#allocation5 + $0x458] ss:$12 sps:$4 sm:$0xff]   ;;  %s1643_s9 = sshll.u32 %s2349_s8, 4  ;;  %s1644_s9 = int_to_ptr.vmem [resolvable:$true] %s1643_s9 }
  0x55   :  { %1128 = vmatpush1.bf16.msra.mxu0 %v2068_v28  ;;  %v2160_v28 = vld [vmem:[#allocation5 + $0x2c0] ss:$12 sps:$4 sm:$0xff]   ;;  %s2309_s10 = scalar_lea.vmem %s1644_s9, 32  ;;  %p2314_p11 = scmp.lt.s32.totalorder %s1644_s9, %s1644_s9 }
  0x56   :  { %1129 = vmatprep.subr.bf16.mxu0 %v2069_v31  ;;  %1812 = vmatpush3.bf16.msra.mxu1 %v2119_v52  ;;  %v2128_v31 = vld [vmem:[#allocation5 + $0x1fc] ss:$12 sps:$4 sm:$0xff]   ;;  %v2185_v52 = vld [vmem:[#allocation5 + $0x3f8] ss:$12 sps:$4 sm:$0xff]   ;;  %p2310_p10 = scmp.ne.s32.totalorder %s1644_s9, %s2309_s10  ;;  %p2315_p12 = scmp.lt.s32.totalorder %s2309_s10, %s2309_s10 }
  0x57   :  { %1813 = vmatprep.subr.bf16.mxu1 %v2120_v53  ;;  %v2146_v53 = vld [vmem:[#allocation5 + $0x258] ss:$12 sps:$4 sm:$0xff]  }
  0x58   :  { %p2316_p13 = por %p2315_p12, %p2314_p11 }
  0x59   :  { %1130 = vmatpush1.bf16.msra.mxu0 %v2071_v37  ;;  %v2170_v37 = vld [vmem:[#allocation5 + $0x2f0] ss:$12 sps:$4 sm:$0xff]  }
  0x5a   :  { %1131 = vmatprep.subr.bf16.mxu0 %v2072_v38  ;;  %1814 = vmatpush3.bf16.msra.mxu1 %v2124_v56  ;;  %v2131_v38 = vld [vmem:[#allocation5 + $0x210] ss:$12 sps:$4 sm:$0xff]   ;;  %p2317_p0 = pnand %p2316_p13, %p2310_p10 }
  0x5b   :  { %1815 = vmatprep.subr.bf16.mxu1 %v2125_v57  ;;  %v2190_v56 = vld [vmem:[#allocation5 + $0x410] ss:$12 sps:$4 sm:$0xff]  }
  0x5c   :  { %v2151_v57 = vld [vmem:[#allocation5 + $0x270] ss:$12 sps:$4 sm:$0xff]  }
  0x5d   :  { %1132 = vmatpush1.bf16.msra.mxu0 %v2074_v42  ;;  %v97_v42 = vcombine.high %v2422_v27, %v2422_v27 }
  0x5e   :  { %1133 = vmatprep.subr.bf16.mxu0 %v2075_v43  ;;  %1816 = vmatpush3.bf16.msra.mxu1 %v2129_v61  ;;  %v2136_v43 = vld [vmem:[#allocation5 + $0x228] ss:$12 sps:$4 sm:$0xff]  }
  0x5f   :  { %1817 = vmatprep.subr.bf16.mxu1 %v2130_v62  ;;  %v2452_v49 = vpack.c.bf16 %v97_v42, %v97_v42  ;;  %v2156_v61 = vld [vmem:[#allocation5 + $0x288] ss:$12 sps:$4 sm:$0xff]   ;;  %v2163_v62 = vld [vmem:[#allocation5 + $0x2a4] ss:$12 sps:$4 sm:$0xff]   ;;  %v2231_v42 = vld [vmem:[#allocation5 + $0x420] ss:$12 sps:$4 sm:$0xff]  }
  0x61   :  { %1134 = vmatpush1.bf16.msra.mxu0 %v2077_v46  ;;  %v2179_v46 = vld [vmem:[#allocation5 + $0x308] ss:$12 sps:$4 sm:$0xff]  }
  0x62   :  { %1135 = vmatprep.subr.bf16.mxu0 %v2078_v48  ;;  %1818 = vmatpush3.bf16.msra.mxu1 %v2134_v2  ;;  %v2141_v48 = vld [vmem:[#allocation5 + $0x240] ss:$12 sps:$4 sm:$0xff]   ;;  %v2168_v2 = vld [vmem:[#allocation5 + $0x2bc] ss:$12 sps:$4 sm:$0xff]  }
  0x63   :  { %1825 = vmatprep.subr.bf16.mxu1 %v2135_v3  ;;  %v2204_v3 = vld [vmem:[#allocation5 + $0x380] ss:$12 sps:$4 sm:$0xff]  }
  0x65   :  { %1136 = vmatpush1.bf16.msra.mxu0 %v2080_v50  ;;  %1310 = vmatmul.mubr.bf16.vlgmr.msra.gmra.mrb[4].mxu1 %v105_v8  ;;  %v2148_v50 = vld [vmem:[#allocation5 + $0x25c] ss:$12 sps:$4 sm:$0xff]  }
  0x66   :  { %1137 = vmatprep.subr.bf16.mxu0 %v2081_v51  ;;  %1826 = vmatpush3.bf16.msra.mxu1 %v2139_v6  ;;  %v2184_v51 = vld [vmem:[#allocation5 + $0x320] ss:$12 sps:$4 sm:$0xff]   ;;  %v2209_v6 = vld [vmem:[#allocation5 + $0x398] ss:$12 sps:$4 sm:$0xff]  }
  0x67   :  { %1827 = vmatprep.subr.bf16.mxu1 %v2140_v9  ;;  %1349 = vmatprep.mubr.bf16.mxu1 %v108_v11  ;;  %v2171_v9 = vld [vmem:[#allocation5 + $0x2d0] ss:$12 sps:$4 sm:$0xff]  }
  0x69   :  { %1138 = vmatpush1.bf16.msra.mxu0 %v2083_v54  ;;  %v2189_v54 = vld [vmem:[#allocation5 + $0x338] ss:$12 sps:$4 sm:$0xff]  }
  0x6a   :  { %1139 = vmatprep.subr.bf16.mxu0 %v2084_v55  ;;  %1828 = vmatpush3.bf16.msra.mxu1 %v2144_v13  ;;  %v2153_v55 = vld [vmem:[#allocation5 + $0x274] ss:$12 sps:$4 sm:$0xff]  }
  0x6b   :  { %1829 = vmatprep.subr.bf16.mxu1 %v2145_v14  ;;  %v2176_v13 = vld [vmem:[#allocation5 + $0x2e8] ss:$12 sps:$4 sm:$0xff]  }
  0x6c   :  { %v2221_v14 = vld [vmem:[#allocation5 + $0x488] ss:$12 sps:$4 sm:$0xff]  }
  0x6d   :  { %1140 = vmatpush1.bf16.msra.mxu0 %v2086_v59  ;;  %v2158_v59 = vld [vmem:[#allocation5 + $0x28c] ss:$12 sps:$4 sm:$0xff]  }
  0x6e   :  { %1141 = vmatprep.subr.bf16.mxu0 %v2089_v60  ;;  %1830 = vmatpush3.bf16.msra.mxu1 %v2149_v18  ;;  %v2195_v60 = vld [vmem:[#allocation5 + $0x428] ss:$12 sps:$4 sm:$0xff]   ;;  %v2181_v18 = vld [vmem:[#allocation5 + $0x300] ss:$12 sps:$4 sm:$0xff]  }
  0x6f   :  { %1831 = vmatprep.subr.bf16.mxu1 %v2150_v19  ;;  %v2188_v19 = vld [vmem:[#allocation5 + $0x31c] ss:$12 sps:$4 sm:$0xff]  }
  0x71   :  { %1142 = vmatpush1.bf16.msra.mxu0 %v2092_v63  ;;  %v2199_v63 = vld [vmem:[#allocation5 + $0x368] ss:$12 sps:$4 sm:$0xff]  }
  0x72   :  { %1143 = vmatprep.subr.bf16.mxu0 %v2094_v1  ;;  %1832 = vmatpush3.bf16.msra.mxu1 %v2154_v22  ;;  %v2161_v1 = vld [vmem:[#allocation5 + $0x2a0] ss:$12 sps:$4 sm:$0xff]  }
  0x73   :  { %1833 = vmatprep.subr.bf16.mxu1 %v2155_v23  ;;  %v2198_v22 = vld [vmem:[#allocation5 + $0x34c] ss:$12 sps:$4 sm:$0xff]   ;;  %v2196_v23 = vld [vmem:[#allocation5 + $0x348] ss:$12 sps:$4 sm:$0xff]  }
  0x75   :  { %1144 = vmatpush1.bf16.msra.mxu0 %v2098_v5  ;;  %v2166_v5 = vld [vmem:[#allocation5 + $0x2b8] ss:$12 sps:$4 sm:$0xff]  }
  0x76   :  { %1154 = vmatprep.subr.bf16.mxu0 %v2103_v7  ;;  %1834 = vmatpush3.bf16.msra.mxu1 %v2159_v26  ;;  %v2173_v7 = vld [vmem:[#allocation5 + $0x2d4] ss:$12 sps:$4 sm:$0xff]   ;;  %v2208_v26 = vld [vmem:[#allocation5 + $0x37c] ss:$12 sps:$4 sm:$0xff]  }
  0x77   :  { %1835 = vmatprep.subr.bf16.mxu1 %v2160_v28  ;;  %v2206_v28 = vld [vmem:[#allocation5 + $0x378] ss:$12 sps:$4 sm:$0xff]  }
  0x78   :  { %1146 = vmatmul.mubr.bf16.vlgmr.msra.gmra.mrb[0].mxu0 %v105_v8  ;;  %v2210_v8 = vld [vmem:[#allocation5 + $0x470] ss:$12 sps:$4 sm:$0xff]  }
  0x79   :  { %1155 = vmatpush1.bf16.msra.mxu0 %v2101_v10  ;;  %1186 = vmatprep.mubr.bf16.mxu0 %v108_v11  ;;  %v2214_v10 = vld [vmem:[#allocation5 + $0x3b0] ss:$12 sps:$4 sm:$0xff]   ;;  %v2178_v11 = vld [vmem:[#allocation5 + $0x2ec] ss:$12 sps:$4 sm:$0xff]  }
  0x7a   :  { %1156 = vmatprep.subr.bf16.mxu0 %v2108_v12  ;;  %1836 = vmatpush3.bf16.msra.mxu1 %v2164_v30  ;;  %v2458_v12 = vpack.c.bf16 %v2422_v27, %v2422_v27  ;;  %v2186_v27 = vld [vmem:[#allocation5 + $0x318] ss:$12 sps:$4 sm:$0xff]   ;;  %v2211_v30 = vld [vmem:[#allocation5 + $0x390] ss:$12 sps:$4 sm:$0xff]  }
  0x7b   :  { %1837 = vmatprep.subr.bf16.mxu1 %v2165_v32  ;;  %v2220_v32 = vld [vmem:[#allocation5 + $0x3c4] ss:$12 sps:$4 sm:$0xff]  }
  0x7d   :  { %1157 = vmatpush1.bf16.msra.mxu0 %v2106_v15  ;;  %v2183_v15 = vld [vmem:[#allocation5 + $0x304] ss:$12 sps:$4 sm:$0xff]  }
  0x7e   :  { %1158 = vmatprep.subr.bf16.mxu0 %v2113_v16  ;;  %1838 = vmatpush3.bf16.msra.mxu1 %v2169_v36  ;;  %v2346_v16 = vmov 0.0   ;;  %v2222_v36 = vld [vmem:[#allocation5 + $0x3d8] ss:$12 sps:$4 sm:$0xff]  }
  0x7f   :  { %1839 = vmatprep.subr.bf16.mxu1 %v2170_v37  ;;  %v2227_v37 = vld [vmem:[#allocation5 + $0x3f4] ss:$12 sps:$4 sm:$0xff]  }
  0x81   :  { %1159 = vmatpush1.bf16.msra.mxu0 %v2111_v20  ;;  %v2193_v20 = vld [vmem:[#allocation5 + $0x334] ss:$12 sps:$4 sm:$0xff]  }
  0x82   :  { %1160 = vmatprep.subr.bf16.mxu0 %v2118_v21  ;;  %1840 = vmatpush3.bf16.msra.mxu1 %v2174_v40  ;;  %v2191_v21 = vld [vmem:[#allocation5 + $0x330] ss:$12 sps:$4 sm:$0xff]   ;;  %v2228_v40 = vld [vmem:[#allocation5 + $0x408] ss:$12 sps:$4 sm:$0xff]  }
  0x83   :  { %1847 = vmatprep.subr.bf16.mxu1 %v2175_v41  ;;  %v2233_v41 = vld [vmem:[#allocation5 + $0x424] ss:$12 sps:$4 sm:$0xff]  }
  0x85   :  { %1161 = vmatpush1.bf16.msra.mxu0 %v2116_v24  ;;  %1350 = vmatmul.mubr.bf16.vlgmr.msra.gmra.mrb[8].mxu1 %v2450_v45  ;;  %v2203_v24 = vld [vmem:[#allocation5 + $0x364] ss:$12 sps:$4 sm:$0xff]  }
  0x86   :  { %1162 = vmatprep.subr.bf16.mxu0 %v2123_v25  ;;  %1848 = vmatpush3.bf16.msra.mxu1 %v2179_v46  ;;  %v2201_v25 = vld [vmem:[#allocation5 + $0x360] ss:$12 sps:$4 sm:$0xff]   ;;  %v2237_v46 = vld [vmem:[#allocation5 + $0x450] ss:$12 sps:$4 sm:$0xff]  }
  0x87   :  { %1849 = vmatprep.subr.bf16.mxu1 %v2180_v47  ;;  %1389 = vmatprep.mubr.bf16.mxu1 %v2452_v49  ;;  %v2242_v47 = vld [vmem:[#allocation5 + $0x46c] ss:$12 sps:$4 sm:$0xff]  }
  0x89   :  { %1163 = vmatpush1.bf16.msra.mxu0 %v2121_v29  ;;  %v2213_v29 = vld [vmem:[#allocation5 + $0x394] ss:$12 sps:$4 sm:$0xff]  }
  0x8a   :  { %1164 = vmatprep.subr.bf16.mxu0 %v2128_v31  ;;  %1850 = vmatpush3.bf16.msra.mxu1 %v2184_v51  ;;  %v2215_v31 = vld [vmem:[#allocation5 + $0x3a8] ss:$12 sps:$4 sm:$0xff]   ;;  %v1440_v51 = vld [vmem:[#allocation7] sm:$0xff] }
  0x8b   :  { %1851 = vmatprep.subr.bf16.mxu1 %v2185_v52 }
  0x8d   :  { %1165 = vmatpush1.bf16.msra.mxu0 %v2126_v33  ;;  %v2218_v33 = vld [vmem:[#allocation5 + $0x3c0] ss:$12 sps:$4 sm:$0xff]  }
  0x8e   :  { %1166 = vmatprep.subr.bf16.mxu0 %v2133_v35  ;;  %1852 = vmatpush3.bf16.msra.mxu1 %v2189_v54  ;;  %v2224_v35 = vld [vmem:[#allocation5 + $0x3dc] ss:$12 sps:$4 sm:$0xff]  }
  0x8f   :  { %1853 = vmatprep.subr.bf16.mxu1 %v2190_v56  ;;  %v1458_v54 = vld [vmem:[#allocation7 + $0x90] sm:$0xff] }
  0x91   :  { %1167 = vmatpush1.bf16.msra.mxu0 %v2131_v38  ;;  %v2225_v38 = vld [vmem:[#allocation5 + $0x3f0] ss:$12 sps:$4 sm:$0xff]  }
  0x92   :  { %1168 = vmatprep.subr.bf16.mxu0 %v2138_v39  ;;  %1854 = vmatpush3.bf16.msra.mxu1 %v2194_v58  ;;  %v2230_v39 = vld [vmem:[#allocation5 + $0x40c] ss:$12 sps:$4 sm:$0xff]  }
  0x93   :  { %1855 = vmatprep.subr.bf16.mxu1 %v2195_v60  ;;  %v1442_v58 = vld [vmem:[#allocation7 + $0x10] sm:$0xff]  ;;  %v1460_v60 = vld [vmem:[#allocation7 + $0xa0] sm:$0xff] }
  0x95   :  { %1169 = vmatpush1.bf16.msra.mxu0 %v2136_v43  ;;  %v2236_v43 = vld [vmem:[#allocation5 + $0x43c] ss:$12 sps:$4 sm:$0xff]  }
  0x96   :  { %1170 = vmatprep.subr.bf16.mxu0 %v2143_v44  ;;  %1856 = vmatpush3.bf16.msra.mxu1 %v2199_v63  ;;  %v2234_v44 = vld [vmem:[#allocation5 + $0x438] ss:$12 sps:$4 sm:$0xff]  }
  0x97   :  { %1857 = vmatprep.subr.bf16.mxu1 %v2200_v0  ;;  %v1444_v0 = vld [vmem:[#allocation7 + $0x20] sm:$0xff] }
  0x99   :  { %1171 = vmatpush1.bf16.msra.mxu0 %v2141_v48  ;;  %v2240_v48 = vld [vmem:[#allocation5 + $0x468] ss:$12 sps:$4 sm:$0xff]  }
  0x9a   :  { %1172 = vmatprep.subr.bf16.mxu0 %v2148_v50  ;;  %1858 = vmatpush3.bf16.msra.mxu1 %v2204_v3  ;;  %v1457_v50 = vld [vmem:[#allocation7 + $0x88] sm:$0xff]  ;;  %v1463_v3 = vld [vmem:[#allocation7 + $0xb8] sm:$0xff] }
  0x9b   :  { %1859 = vmatprep.subr.bf16.mxu1 %v2205_v4 }
  0x9d   :  { %1173 = vmatpush1.bf16.msra.mxu0 %v2146_v53  ;;  %v1441_v53 = vld [vmem:[#allocation7 + $0x8] sm:$0xff] }
  0x9e   :  { %1174 = vmatprep.subr.bf16.mxu0 %v2153_v55  ;;  %1860 = vmatpush3.bf16.msra.mxu1 %v2209_v6  ;;  %v1459_v55 = vld [vmem:[#allocation7 + $0x98] sm:$0xff]  ;;  %v1966_v56 = vpack.c.bf16 %v1441_v53, %v1440_v51  ;;  %v1446_v6 = vld [vmem:[#allocation7 + $0x30] sm:$0xff] }
  0x9f   :  { %1861 = vmatprep.subr.bf16.mxu1 %v2210_v8  ;;  %v1464_v8 = vld [vmem:[#allocation7 + $0xc0] sm:$0xff] }
  0xa1   :  { %1175 = vmatpush1.bf16.msra.mxu0 %v2151_v57  ;;  %v1968_v57 = vpack.c.bf16 %v1459_v55, %v1458_v54 }
  0xa2   :  { %1176 = vmatprep.subr.bf16.mxu0 %v2158_v59  ;;  %1862 = vmatpush3.bf16.msra.mxu1 %v2214_v10  ;;  %v1443_v59 = vld [vmem:[#allocation7 + $0x18] sm:$0xff] }
  0xa3   :  { %1923 = vmatprep.subr.bf16.mxu1 %v2346_v16 }
  0xa5   :  { %1177 = vmatpush1.bf16.msra.mxu0 %v2156_v61  ;;  %1390 = vmatmul.mubr.bf16.vlgmr.msra.gmra.mrb[12].mxu1 %v2458_v12  ;;  %v1461_v61 = vld [vmem:[#allocation7 + $0xa8] sm:$0xff] }
  0xa6   :  { %1178 = vmatprep.subr.bf16.mxu0 %v2163_v62  ;;  %1924 = vmatpush3.bf16.msra.mxu1 %v2221_v14  ;;  %v1970_v62 = vpack.c.bf16 %v1443_v59, %v1442_v58  ;;  %v1972_v63 = vpack.c.bf16 %v1461_v61, %v1460_v60  ;;  %v1466_v14 = vld [vmem:[#allocation7 + $0xd0] sm:$0xff] }
  0xa7   :  { %1925 = vmatprep.mubr.msk.bf16.mxu1 %vm2347_vm1, %v2346_v16 }
  0xa9   :  { %1179 = vmatpush1.bf16.msra.mxu0 %v2161_v1  ;;  %v1445_v1 = vld [vmem:[#allocation7 + $0x28] sm:$0xff] }
  0xaa   :  { %1180 = vmatprep.subr.bf16.mxu0 %v2168_v2  ;;  %v1462_v2 = vld [vmem:[#allocation7 + $0xb0] sm:$0xff]  ;;  %v1974_v4 = vpack.c.bf16 %v1445_v1, %v1444_v0 }
  0xad   :  { %1181 = vmatpush1.bf16.msra.mxu0 %v2166_v5  ;;  %1926 = vmatmul.mubr.msk.bf16.vlgmr.msra.gmra.mrb[16].mxu1 %vm1109_vm0, %v2431_v34  ;;  %v2217_v34 = vld [vmem:[#allocation5 + $0x3ac] ss:$12 sps:$4 sm:$0xff]   ;;  %v1976_v5 = vpack.c.bf16 %v1463_v3, %v1462_v2  ;;  %v312_v2 = vsub.s32 0, %v2416_v17  ;;  %v316_v3 = vsub.s32 1, %v2416_v17 }
  0xae   :  { %1182 = vmatprep.subr.bf16.mxu0 %v2173_v7  ;;  %v1447_v7 = vld [vmem:[#allocation7 + $0x38] sm:$0xff] }
  0xaf   :  { %v1978_v10 = vpack.c.bf16 %v1447_v7, %v1446_v6 }
  0xb1   :  { %1183 = vmatpush1.bf16.msra.mxu0 %v2171_v9  ;;  %v1465_v9 = vld [vmem:[#allocation7 + $0xc8] sm:$0xff] }
  0xb2   :  { %1184 = vmatprep.subr.bf16.mxu0 %v2178_v11  ;;  %v1980_v11 = vpack.c.bf16 %v1465_v9, %v1464_v8 }
  0xb5   :  { %1185 = vmatpush1.bf16.msra.mxu0 %v2176_v13  ;;  %v1449_v13 = vld [vmem:[#allocation7 + $0x48] sm:$0xff] }
  0xb6   :  { %1195 = vmatprep.subr.bf16.mxu0 %v2183_v15  ;;  %v1467_v15 = vld [vmem:[#allocation7 + $0xd8] sm:$0xff] }
  0xb8   :  { %1187 = vmatmul.mubr.bf16.vlgmr.msra.gmra.mrb[0].mxu0 %v2450_v45  ;;  %v2239_v45 = vld [vmem:[#allocation5 + $0x454] ss:$12 sps:$4 sm:$0xff]  }
  0xb9   :  { %1196 = vmatpush1.bf16.msra.mxu0 %v2181_v18  ;;  %1227 = vmatprep.mubr.bf16.mxu0 %v2452_v49  ;;  %v1456_v49 = vld [vmem:[#allocation7 + $0x80] sm:$0xff] }
  0xba   :  { %1197 = vmatprep.subr.bf16.mxu0 %v2188_v19  ;;  %v1964_v52 = vpack.c.bf16 %v1457_v50, %v1456_v49  ;;  %v1984_v19 = vpack.c.bf16 %v1467_v15, %v1466_v14  ;;  %v1473_v14 = vld [vmem:[#allocation7 + $0x108] sm:$0xff] }
  0xbc   :  { %1965 = vmatprep.subr.bf16.mxu1 %v1964_v52 }
  0xbd   :  { %1198 = vmatpush1.bf16.msra.mxu0 %v2186_v27  ;;  %1967 = vmatpush3.bf16.msra.mxu1 %v1966_v56  ;;  %v1450_v27 = vld [vmem:[#allocation7 + $0x50] sm:$0xff] }
  0xbe   :  { %1199 = vmatprep.subr.bf16.mxu0 %v2193_v20  ;;  %1969 = vmatprep.subr.bf16.mxu1 %v1968_v57  ;;  %v1451_v20 = vld [vmem:[#allocation7 + $0x58] sm:$0xff] }
  0xc1   :  { %1200 = vmatpush1.bf16.msra.mxu0 %v2191_v21  ;;  %1971 = vmatpush3.bf16.msra.mxu1 %v1970_v62  ;;  %v1986_v21 = vpack.c.bf16 %v1451_v20, %v1450_v27  ;;  %v1474_v20 = vld [vmem:[#allocation7 + $0x110] sm:$0xff] }
  0xc2   :  { %1201 = vmatprep.subr.bf16.mxu0 %v2198_v22  ;;  %1973 = vmatprep.subr.bf16.mxu1 %v1972_v63 }
  0xc5   :  { %1202 = vmatpush1.bf16.msra.mxu0 %v2196_v23  ;;  %1975 = vmatpush3.bf16.msra.mxu1 %v1974_v4 }
  0xc6   :  { %1203 = vmatprep.subr.bf16.mxu0 %v2203_v24  ;;  %1977 = vmatprep.subr.bf16.mxu1 %v1976_v5 }
  0xc9   :  { %1204 = vmatpush1.bf16.msra.mxu0 %v2201_v25  ;;  %1979 = vmatpush3.bf16.msra.mxu1 %v1978_v10 }
  0xca   :  { %1205 = vmatprep.subr.bf16.mxu0 %v2208_v26  ;;  %1981 = vmatprep.subr.bf16.mxu1 %v1980_v11 }
  0xcd   :  { %1206 = vmatpush1.bf16.msra.mxu0 %v2206_v28 }
  0xce   :  { %1207 = vmatprep.subr.bf16.mxu0 %v2213_v29  ;;  %v1468_v29 = vld [vmem:[#allocation7 + $0xe0] sm:$0xff] }
  0xd1   :  { %1208 = vmatpush1.bf16.msra.mxu0 %v2211_v30  ;;  %v1469_v30 = vld [vmem:[#allocation7 + $0xe8] sm:$0xff] }
  0xd2   :  { %1209 = vmatprep.subr.bf16.mxu0 %v2217_v34 }
  0xd5   :  { %1210 = vmatpush1.bf16.msra.mxu0 %v2215_v31 }
  0xd6   :  { %1211 = vmatprep.subr.bf16.mxu0 %v2220_v32  ;;  %v1988_v32 = vpack.c.bf16 %v1469_v30, %v1468_v29  ;;  %v1480_v29 = vld [vmem:[#allocation7 + $0x140] sm:$0xff]  ;;  %v1481_v30 = vld [vmem:[#allocation7 + $0x148] sm:$0xff] }
  0xd9   :  { %1212 = vmatpush1.bf16.msra.mxu0 %v2218_v33  ;;  %v1452_v33 = vld [vmem:[#allocation7 + $0x60] sm:$0xff] }
  0xda   :  { %1213 = vmatprep.subr.bf16.mxu0 %v2224_v35  ;;  %v1453_v35 = vld [vmem:[#allocation7 + $0x68] sm:$0xff] }
  0xdd   :  { %1214 = vmatpush1.bf16.msra.mxu0 %v2222_v36 }
  0xde   :  { %1215 = vmatprep.subr.bf16.mxu0 %v2227_v37  ;;  %v1990_v37 = vpack.c.bf16 %v1453_v35, %v1452_v33  ;;  %v1484_v33 = vld [vmem:[#allocation7 + $0x160] sm:$0xff]  ;;  %v1485_v35 = vld [vmem:[#allocation7 + $0x168] sm:$0xff] }
  0xe1   :  { %1216 = vmatpush1.bf16.msra.mxu0 %v2225_v38  ;;  %v1470_v38 = vld [vmem:[#allocation7 + $0xf0] sm:$0xff] }
  0xe2   :  { %1217 = vmatprep.subr.bf16.mxu0 %v2230_v39  ;;  %v1471_v39 = vld [vmem:[#allocation7 + $0xf8] sm:$0xff] }
  0xe5   :  { %1218 = vmatpush1.bf16.msra.mxu0 %v2228_v40  ;;  %v1992_v40 = vpack.c.bf16 %v1471_v39, %v1470_v38  ;;  %v1487_v38 = vld [vmem:[#allocation7 + $0x178] sm:$0xff] }
  0xe6   :  { %1219 = vmatprep.subr.bf16.mxu0 %v2233_v41  ;;  %v1454_v41 = vld [vmem:[#allocation7 + $0x70] sm:$0xff] }
  0xe9   :  { %1220 = vmatpush1.bf16.msra.mxu0 %v2231_v42  ;;  %v1455_v42 = vld [vmem:[#allocation7 + $0x78] sm:$0xff] }
  0xea   :  { %1221 = vmatprep.subr.bf16.mxu0 %v2236_v43  ;;  %v1994_v43 = vpack.c.bf16 %v1455_v42, %v1454_v41 }
  0xed   :  { %1222 = vmatpush1.bf16.msra.mxu0 %v2234_v44  ;;  %v2348_v44 = vmov 0.0|0.0  }
  0xee   :  { %1223 = vmatprep.subr.bf16.mxu0 %v2239_v45  ;;  %v320_v45 = vsub.s32 2, %v2416_v17 }
  0xf1   :  { %1224 = vmatpush1.bf16.msra.mxu0 %v2237_v46  ;;  %v308_v46 = vld [vmem:[%s2502_s2] sm:$0x7] }
  0xf2   :  { %1225 = vmatprep.subr.bf16.mxu0 %v2242_v47  ;;  %v321_v47 = vrot.slane %v308_v46, %v320_v45  ;;  %v313_v4 = vrot.slane %v308_v46, %v312_v2  ;;  %v317_v5 = vrot.slane %v308_v46, %v316_v3  ;;  %v1802_v45 = vld [vmem:[%s2504_s4] ss:$0 sm:$0xff] }
  0xf5   :  { %1226 = vmatpush1.bf16.msra.mxu0 %v2240_v48 }
  0xf8   :  { %1228 = vmatmul.mubr.bf16.vlgmr.msra.gmra.mrb[0].mxu0 %v2458_v12  ;;  %v1448_v12 = vld [vmem:[#allocation7 + $0x40] sm:$0xff] }
  0xf9   :  { %v1982_v18 = vpack.c.bf16 %v1449_v13, %v1448_v12  ;;  %v1472_v13 = vld [vmem:[#allocation7 + $0x100] sm:$0xff] }
  0xfb   :  { %1983 = vmatpush3.bf16.msra.mxu1 %v1982_v18 }
  0xfc   :  { %1985 = vmatprep.subr.bf16.mxu1 %v1984_v19  ;;  %v1997_v19 = vpack.c.bf16 %v1473_v14, %v1472_v13 }
  0xff   :  { %1987 = vmatpush3.bf16.msra.mxu1 %v1986_v21  ;;  %v1475_v21 = vld [vmem:[#allocation7 + $0x118] sm:$0xff] }
 0x100   :  { %1989 = vmatprep.subr.bf16.mxu1 %v1988_v32  ;;  %v2000_v17 = vpack.c.bf16 %v1475_v21, %v1474_v20 }
 0x103   :  { %1991 = vmatpush3.bf16.msra.mxu1 %v1990_v37  ;;  %v1486_v37 = vld [vmem:[#allocation7 + $0x170] sm:$0xff] }
 0x104   :  { %1993 = vmatprep.subr.bf16.mxu1 %v1992_v40  ;;  %v2018_v39 = vpack.c.bf16 %v1487_v38, %v1486_v37 }
 0x107   :  { %1995 = vmatpush3.bf16.msra.mxu1 %v1994_v43 }
 0x108   :  { %1996 = vmatprep.subr.bf16.mxu1 %v2348_v44 }
 0x118   :  { %v1270_v22 = vpop.f32.mrb[0].mxu1 }
 0x119   :  { %v1272_v23 = vpop.f32.mrb[1].mxu1 }
 0x11a   :  { %v1274_v24 = vpop.f32.mrb[2].mxu1 }
 0x11b   :  { %v1275_v25 = vpop.f32.mrb[3].mxu1  ;;  %v1476_v24 = vld [vmem:[#allocation7 + $0x120] sm:$0xff] }
 0x138   :  { %v1819_v26 = vpop.f32.mrb[4].mxu1 }
 0x139   :  { %v1820_v28 = vpop.f32.mrb[5].mxu1 }
 0x13a   :  { %v1821_v34 = vadd.f32 %v1820_v28, %v1819_v26  ;;  %v1822_v31 = vpop.f32.mrb[6].mxu1  ;;  %v1479_v26 = vld [vmem:[#allocation7 + $0x138] sm:$0xff] }
 0x13b   :  { %v1823_v36 = vpop.f32.mrb[7].mxu1  ;;  %v1483_v31 = vld [vmem:[#allocation7 + $0x158] sm:$0xff] }
 0x13c   :  { %v1312_v48 = vadd.f32 %v1821_v34, %v321_v47  ;;  %v2009_v34 = vpack.c.bf16 %v1481_v30, %v1480_v29  ;;  %v2015_v36 = vpack.c.bf16 %v1485_v35, %v1484_v33 }
 0x158   :  { %v1841_v49 = vpop.f32.mrb[8].mxu1 }
 0x159   :  { %v1842_v50 = vpop.f32.mrb[9].mxu1 }
 0x15a   :  { %v1843_v51 = vadd.f32 %v1842_v50, %v1841_v49  ;;  %v1844_v52 = vpop.f32.mrb[10].mxu1 }
 0x15b   :  { %v1845_v53 = vpop.f32.mrb[11].mxu1 }
 0x15c   :  { %v1352_v54 = vadd.f32 %v1843_v51, %v1312_v48 }
 0x178   :  { %v1863_v55 = vpop.f32.mrb[12].mxu1 }
 0x179   :  { %v1864_v56 = vpop.f32.mrb[13].mxu1 }
 0x17a   :  { %v1865_v57 = vadd.f32 %v1864_v56, %v1863_v55  ;;  %v1866_v58 = vpop.f32.mrb[14].mxu1 }
 0x17b   :  { %v1867_v59 = vpop.f32.mrb[15].mxu1 }
 0x17c   :  { %v1392_v60 = vadd.f32 %v1865_v57, %v1352_v54 }
 0x180   :  { %v1431_v61 = vpop.f32.mrb[16].mxu1 }
 0x181   :  { %v1432_v62 = vadd.f32 %v1431_v61, %v1392_v60  ;;  %v1927_v63 = vpop.f32.mrb[17].mxu1 }
 0x182   :  { %v1434_v0 = vpop.f32.mrb[18].mxu1 }
 0x183   :  { %v1928_v1 = vpop.f32.mrb[19].mxu1  ;;  %v1439_v40 = vmax.f32 %v1432_v62, 0.0 }
 0x1cb   :  { %v1229_v6 = vpop.f32.mrb[0].mxu0 }
 0x1cc   :  { %v2020_v7 = vadd.f32 %v1229_v6, %v313_v4  ;;  %v1231_v8 = vpop.f32.mrb[1].mxu0 }
 0x1cd   :  { %v2022_v9 = vadd.f32 %v1231_v8, %v317_v5  ;;  %v1233_v10 = vpop.f32.mrb[2].mxu0 }
 0x1ce   :  { %v2021_v11 = vadd.f32 %v2020_v7, %v1270_v22  ;;  %v1234_v12 = vpop.f32.mrb[3].mxu0  ;;  %v1477_v22 = vld [vmem:[#allocation7 + $0x128] sm:$0xff] }
 0x1cf   :  { %v2023_v15 = vadd.f32 %v2022_v9, %v1272_v23  ;;  %v2003_v25 = vpack.c.bf16 %v1477_v22, %v1476_v24  ;;  %v1478_v23 = vld [vmem:[#allocation7 + $0x130] sm:$0xff] }
 0x1d0   :  { %v1437_v27 = vmax.f32 %v2021_v11, 0.0  ;;  %v2006_v28 = vpack.c.bf16 %v1479_v26, %v1478_v23 }
 0x1d1   :  { %v1438_v18 = vmax.f32 %v2023_v15, 0.0 }
 0x1d3   :  { %1559 = vmatprep.mubr.f32.mxu1 %v1438_v18 }
 0x1d4   :  { %1560 = vmatmul.mubr.f32.vlgmr.msra.gmra.mrb[20].mxu1 %v1437_v27 }
 0x1d5   :  { %1998 = vmatpush3.bf16.msra.mxu1 %v1997_v19  ;;  %1961 = vmatprep.mubr.msk.f32.mxu1 %vm2347_vm1, %v2346_v16  ;;  %v1482_v16 = vld [vmem:[#allocation7 + $0x150] sm:$0xff] }
 0x1d6   :  { %1999 = vmatprep.subr.bf16.mxu1 %v2348_v44  ;;  %v2012_v32 = vpack.c.bf16 %v1483_v31, %v1482_v16 }
 0x1d9   :  { %2001 = vmatpush3.bf16.msra.mxu1 %v2000_v17 }
 0x1da   :  { %2002 = vmatprep.subr.bf16.mxu1 %v2348_v44 }
 0x1dd   :  { %2004 = vmatpush3.bf16.msra.mxu1 %v2003_v25 }
 0x1de   :  { %2005 = vmatprep.subr.bf16.mxu1 %v2348_v44 }
 0x1e1   :  { %2007 = vmatpush3.bf16.msra.mxu1 %v2006_v28 }
 0x1e2   :  { %2008 = vmatprep.subr.bf16.mxu1 %v2348_v44 }
 0x1e5   :  { %2010 = vmatpush3.bf16.msra.mxu1 %v2009_v34 }
 0x1e6   :  { %2011 = vmatprep.subr.bf16.mxu1 %v2348_v44 }
 0x1e9   :  { %2013 = vmatpush3.bf16.msra.mxu1 %v2012_v32 }
 0x1ea   :  { %2014 = vmatprep.subr.bf16.mxu1 %v2348_v44 }
 0x1ed   :  { %2016 = vmatpush3.bf16.msra.mxu1 %v2015_v36 }
 0x1ee   :  { %2017 = vmatprep.subr.bf16.mxu1 %v2348_v44 }
 0x1f1   :  { %2019 = vmatpush3.bf16.msra.mxu1 %v2018_v39 }
 0x1f4   :  { %1962 = vmatmul.mubr.f32.vlgmr.msra.gmra.mrb[22].mxu1 %v1439_v40 }
 0x2a7   :  { %v1903_v41 = vpop.f32.mrb[20].mxu1 }
 0x2a8   :  { %v1904_v42 = vpop.f32.mrb[21].mxu1 }
 0x2a9   :  { %v1905_v43 = vadd.f32 %v1904_v42, %v1903_v41 }
 0x2ab   :  { %v1562_v46 = vadd.f32 %v1905_v43, %v1802_v45 }
 0x2c7   :  { %v1631_v47 = vpop.f32.mrb[22].mxu1 }
 0x2c8   :  { %v1632_v48 = vadd.f32 %v1631_v47, %v1562_v46  ;;  %v1963_v49 = vpop.f32.mrb[23].mxu1 }
 0x2ca   :  { %v1635_v50 = vmax.f32 %v1632_v48, 0.0 }
 0x2cc   :  { %1636 = vst [vmem:[#allocation8] sm:$0x3] %v1635_v50 }
 0x2cd   :  { %2320 = shalt.err (!%p2317_p0)
}
 0x2ce   :  { %s2321_s4 = scalar_lea.hbm %s2505_s5, 32 }
 0x2cf   :  { %p2322_p1 = scmp.ne.s32.totalorder %s2505_s5, %s2321_s4  ;;  %p2325_p2 = scmp.lt.u32.totalorder %s2321_s4, %s2505_s5 }
 0x2d1   :  { %p2327_p3 = pnand %p2325_p2, %p2322_p1 }
 0x2d3   :  { %2330 = shalt.err (!%p2327_p3)
}
 0x2d4   :  { %1646 = dma.vmem_to_hbm [thread:$0]  %s1644_s9, 32, %s2505_s5, [#allocation4]  }
 0x2d5   :  { %2335 = dma.done.wait [#allocation4], 32  }
 0x2d6   :  { %2336 = vsyncadd [#allocation4], 4294967264 }
 0x2d7   :  { %1650 = vsyncpa [#allocation3], 1 }
 0x2d8   :  { %1651 = vsyncpa [#allocation6], 1 }
 0x2d9   :  { %1652 = vsyncpa [#allocation4], 1 }

</bundles_post_ra>
